<compile_context>
chip_gen: v7x
topology: tpu7x:2x2x1
jax: 0.10.0
libtpu: 0.0.40
codegen_flags: <defaults>
</compile_context>

<pallas_src>
import functools

import numpy as np
import jax
import jax.numpy as jnp
from jax.experimental import pallas as pl
from jax.experimental.pallas import tpu as pltpu


# ----------------------------- fused kernel ---------------------------------


def _splat_fused_kernel(x_ref, wc_ref, bc_ref, w1_ref, b1_ref, w2_ref, b2_ref,
                        o_ref, *, Bt, HW, radix, cardinality, channels):
    """im2col conv + bias + ReLU + split-attention for Bt batch elements.

    x_ref : (Bt, HW, K)        bf16 im2col patches, K = KH*KW*Cin
    wc_ref: (K, RC)            bf16 block-diagonal grouped-conv weight
    bc_ref: (1, RC)            f32 conv bias
    w1_ref: (channels, inter)  bf16 fc1 as block-diag dense
    b1_ref: (1, inter)         f32
    w2_ref: (inter, RC)        bf16 fc2 as block-diag dense
    b2_ref: (1, RC)            f32
    o_ref : (Bt, HW, RC)       f32 attention-weighted radix tensor (fold in wrapper)
    """
    K = x_ref.shape[-1]
    RC = radix * channels
    C = channels

    # ---- grouped conv as ONE lane-dense MXU dot: (Bt*HW, K) x (K, RC) --------
    xs = x_ref[...].reshape(Bt * HW, K)                  # leading-dim merge (layout no-op)
    y = jnp.dot(xs, wc_ref[...], preferred_element_type=jnp.float32)
    y = jnp.maximum(y + bc_ref[...], 0.0)                # relu(conv + b), (Bt*HW, RC)
    y3 = y.reshape(Bt, HW, RC)

    # ---- global average pool: full 128-lane column reduce, fold halves tiny --
    gap_rc = jnp.sum(y3, axis=1) * (1.0 / float(HW))     # (Bt, RC)
    gap = gap_rc[:, 0:C]
    for r in range(1, radix):
        gap = gap + gap_rc[:, r * C:(r + 1) * C]         # (Bt, C) -- tiny tensor

    # ---- squeeze-excite fc1(+ReLU) / fc2, batched over Bt --------------------
    h1 = jnp.dot(gap.astype(w1_ref.dtype), w1_ref[...],
                 preferred_element_type=jnp.float32) + b1_ref[...]
    h1 = jnp.maximum(h1, 0.0)                            # (Bt, inter)
    a2 = jnp.dot(h1.astype(w2_ref.dtype), w2_ref[...],
                 preferred_element_type=jnp.float32) + b2_ref[...]     # (Bt, RC)

    # ---- rSoftMax over radix, built directly in RC lane order ----------------
    if radix == 2 and cardinality == 1:
        # fc2 channel order with cardinality==1 is (radix, channels), i.e. exactly
        # y's lane order; a half-width lane roll pairs each channel with its
        # other-radix logit, so the whole softmax stays 128-lane dense.
        a2_sw = pltpu.roll(a2, channels, axis=1)          # swap the two 64-lane halves
        m = jnp.maximum(a2, a2_sw)
        e = jnp.exp(a2 - m)
        denom = e + pltpu.roll(e, channels, axis=1)
        att = e * pl.reciprocal(denom, approx=True)       # (Bt, RC), lane-aligned with y
    elif radix > 1:
        # TODO(synk): generic cardinality>1 layout is untested (matches prior version).
        ch_per = channels // cardinality
        rows = []
        for r in range(radix):
            parts = [a2[:, c * radix * ch_per + r * ch_per:
                           c * radix * ch_per + (r + 1) * ch_per]
                     for c in range(cardinality)]
            rows.append(parts[0] if cardinality == 1
                        else jnp.concatenate(parts, axis=1))
        logits = jnp.stack(rows, axis=1)                  # (Bt, radix, channels)
        m = jnp.max(logits, axis=1, keepdims=True)
        e = jnp.exp(logits - m)
        sm = e / jnp.sum(e, axis=1, keepdims=True)
        att = jnp.concatenate([sm[:, r, :] for r in range(radix)], axis=1)
    else:
        att = 1.0 / (1.0 + jnp.exp(-a2))                  # sigmoid, (Bt, RC)

    # ---- attention weighting, full 128-lane width; unmasked lane-dense store -
    o_ref[...] = (y3 * att[:, None, :]).astype(o_ref.dtype)   # (Bt, HW, RC)


# ----------------------------- weight preparation (done once) ---------------


def conv_w_to_tap_blockdiag(w, groups):
    """(Cout, Cin_g, KH, KW) grouped conv weight -> (KH*KW, Cin, Cout) dense,
    block-diagonal over the conv groups (zeros off-diagonal)."""
    Cout, Cin_g, KH, KW = w.shape
    Cout_g = Cout // groups
    taps = []
    for kh in range(KH):
        for kw in range(KW):
            blocks = []
            for g in range(groups):
                blk = jnp.transpose(w[g * Cout_g:(g + 1) * Cout_g, :, kh, kw])  # (Cin_g, Cout_g)
                blocks.append(jnp.pad(blk, ((0, 0),
                                            (g * Cout_g, Cout - (g + 1) * Cout_g))))
            taps.append(jnp.concatenate(blocks, axis=0))  # (Cin, Cout)
    return jnp.stack(taps, axis=0)                        # (KH*KW, Cin, Cout)


def grouped_1x1_to_dense(w, groups):
    """(out_ch, in_per_group, 1, 1) grouped 1x1 conv weight -> (in_ch, out_ch)."""
    w2 = w.reshape(w.shape[0], w.shape[1])                # (out_ch, in_g)
    out_ch, _ = w2.shape
    out_g = out_ch // groups
    blocks = []
    for g in range(groups):
        blk = jnp.transpose(w2[g * out_g:(g + 1) * out_g, :])   # (in_g, out_g)
        blocks.append(jnp.pad(blk, ((0, 0),
                                    (g * out_g, out_ch - (g + 1) * out_g))))
    return jnp.concatenate(blocks, axis=0)                # (in_ch, out_ch)


def prepare_dense_weights(params, *, radix, cardinality):
    """Densify all grouped weights once and cast the matmul operands to bf16
    (hoisted out of the forward path)."""
    G = radix * cardinality
    wc_tap = conv_w_to_tap_blockdiag(params["conv_w"], G)     # (KH*KW, Cin, RC)
    T, Cin, RC = wc_tap.shape
    return dict(
        # flattened K order = (kh, kw, cin), matching the wrapper's im2col
        wc=wc_tap.reshape(T * Cin, RC).astype(jnp.bfloat16),
        bc=params["conv_b"].reshape(1, -1).astype(jnp.float32),
        w1=grouped_1x1_to_dense(params["fc1_w"], cardinality).astype(jnp.bfloat16),
        b1=params["fc1_b"].reshape(1, -1).astype(jnp.float32),
        w2=grouped_1x1_to_dense(params["fc2_w"], cardinality).astype(jnp.bfloat16),
        b2=params["fc2_b"].reshape(1, -1).astype(jnp.float32),
    )


# ----------------------------- forward wrapper ------------------------------


def split_attention_forward(x_nchw, w, *, radix, cardinality, channels, padding,
                            kernel_size, batch_tile=2):
    """Full SplitAttentionConv2D forward; input/output in PyTorch NCHW."""
    KH, KW = kernel_size
    ph, pw = padding
    x = jnp.transpose(x_nchw, (0, 2, 3, 1))               # NCHW -> NHWC
    B, H, W, Cin = x.shape
    Ho = H + 2 * ph - KH + 1
    Wo = W + 2 * pw - KW + 1
    HW = Ho * Wo
    RC = radix * channels
    K = KH * KW * Cin

    # Batch tile: fills the MXU M dimension (Bt*HW rows) while keeping >= 2 grid
    # steps where possible (both v7x TensorCores busy via "parallel").
    Bt = max(1, min(batch_tile, B))
    while B % Bt:
        Bt -= 1

    # Wrapper-side im2col (layout plumbing, fused by XLA): feature order
    # (kh, kw, cin) matches the flattened block-diagonal conv weight.
    xp = jnp.pad(x, ((0, 0), (ph, ph), (pw, pw), (0, 0)))
    cols = [xp[:, kh:kh + Ho, kw:kw + Wo, :] for kh in range(KH) for kw in range(KW)]
    xcols = jnp.concatenate(cols, axis=-1).reshape(B, HW, K).astype(jnp.bfloat16)

    kernel = functools.partial(_splat_fused_kernel, Bt=Bt, HW=HW, radix=radix,
                               cardinality=cardinality, channels=channels)
    out_full = pl.pallas_call(
        kernel,
        out_shape=jax.ShapeDtypeStruct((B, HW, RC), jnp.float32),
        grid_spec=pltpu.PrefetchScalarGridSpec(
            num_scalar_prefetch=0,
            grid=(B // Bt,),
            in_specs=[
                pl.BlockSpec((Bt, HW, K), lambda b: (b, 0, 0)),
                pl.BlockSpec((K, RC), lambda b: (0, 0)),
                pl.BlockSpec((1, RC), lambda b: (0, 0)),
                pl.BlockSpec(w["w1"].shape, lambda b: (0, 0)),
                pl.BlockSpec(w["b1"].shape, lambda b: (0, 0)),
                pl.BlockSpec(w["w2"].shape, lambda b: (0, 0)),
                pl.BlockSpec(w["b2"].shape, lambda b: (0, 0)),
            ],
            out_specs=pl.BlockSpec((Bt, HW, RC), lambda b: (b, 0, 0)),
        ),
        compiler_params=pltpu.CompilerParams(
            dimension_semantics=("parallel",)),
    )(xcols, w["wc"], w["bc"], w["w1"], w["b1"], w["w2"], w["b2"])

    # Radix fold (sum over the attention-weighted splits) + NHWC->NCHW: cheap XLA
    # elementwise/layout work, fused with the boundary transpose.
    out = out_full[..., 0:channels]
    for r in range(1, radix):
        out = out + out_full[..., r * channels:(r + 1) * channels]
    out = out.reshape(B, Ho, Wo, channels)
    return jnp.transpose(out, (0, 3, 1, 2)).astype(x_nchw.dtype)


# ----------------------------- reference (independent path) -----------------


def reference_forward(x_nchw, params, *, radix, cardinality, channels, padding):
    x = jnp.transpose(x_nchw, (0, 2, 3, 1))
    G = cardinality * radix
    w_hwio = jnp.transpose(params["conv_w"], (2, 3, 1, 0))
    y = jax.lax.conv_general_dilated(
        x, w_hwio, window_strides=(1, 1),
        padding=((padding[0], padding[0]), (padding[1], padding[1])),
        feature_group_count=G,
        dimension_numbers=("NHWC", "HWIO", "NHWC")) + params["conv_b"]
    y = jnp.maximum(y, 0.0)
    splits = [y[..., r * channels:(r + 1) * channels] for r in range(radix)]
    gap = sum(splits) if radix > 1 else y
    gap = jnp.mean(gap, axis=(1, 2), keepdims=True)       # (B,1,1,channels)

    def conv1x1(z, wt, bias, groups):
        wio = jnp.transpose(wt, (2, 3, 1, 0))
        return jax.lax.conv_general_dilated(
            z, wio, (1, 1), "VALID", feature_group_count=groups,
            dimension_numbers=("NHWC", "HWIO", "NHWC")) + bias

    h = jnp.maximum(conv1x1(gap, params["fc1_w"], params["fc1_b"], cardinality), 0.0)
    a = conv1x1(h, params["fc2_w"], params["fc2_b"], cardinality)[:, 0, 0, :]
    B = a.shape[0]
    if radix > 1:
        ch_per = channels // cardinality
        a = a.reshape(B, cardinality, radix, ch_per).transpose(0, 2, 1, 3)
        a = jax.nn.softmax(a, axis=1).reshape(B, radix * channels)
    else:
        a = jax.nn.sigmoid(a)
    out = sum(a[:, None, None, r * channels:(r + 1) * channels] * splits[r]
              for r in range(radix))
    return jnp.transpose(out, (0, 3, 1, 2))


# ----------------------------- main -----------------------------------------


if __name__ == "__main__":
    key = jax.random.PRNGKey(0)
    B, Cin, Hs, Ws = 4, 64, 8, 8          # B=4 -> Bt=2, grid=2 (both v7x TCs busy)
    channels = 64
    radix, cardinality = 2, 1             # default groups=1
    reduction_factor = 4
    KH = KW = 3
    padding = (1, 1)
    inter = max(Cin * radix // reduction_factor, 32)
    G = cardinality * radix

    ks = jax.random.split(key, 7)
    x = jax.random.normal(ks[0], (B, Cin, Hs, Ws), jnp.float32)
    params = dict(
        conv_w=jax.random.normal(ks[1], (channels * radix, Cin // G, KH, KW),
                                 jnp.float32) * 0.05,
        conv_b=jax.random.normal(ks[2], (channels * radix,), jnp.float32) * 0.05,
        fc1_w=jax.random.normal(ks[3], (inter, channels // cardinality, 1, 1),
                                jnp.float32) * 0.05,
        fc1_b=jax.random.normal(ks[4], (inter,), jnp.float32) * 0.05,
        fc2_w=jax.random.normal(ks[5], (channels * radix, inter // cardinality, 1, 1),
                                jnp.float32) * 0.05,
        fc2_b=jax.random.normal(ks[6], (channels * radix,), jnp.float32) * 0.05,
    )

    # Densify grouped weights + bf16-cast ONCE (hoisted out of the forward path).
    dense = prepare_dense_weights(params, radix=radix, cardinality=cardinality)

    fwd = jax.jit(functools.partial(
        split_attention_forward, radix=radix, cardinality=cardinality,
        channels=channels, padding=padding, kernel_size=(KH, KW), batch_tile=2))

    out = jax.block_until_ready(fwd(x, dense))
    assert out.shape == (B, channels, Hs, Ws)

    ref = reference_forward(x, params, radix=radix, cardinality=cardinality,
                            channels=channels, padding=padding)
    # bf16 MXU operands (per perf review) -> loosened tolerance vs the f32 reference.
    np.testing.assert_allclose(np.asarray(out), np.asarray(ref), rtol=3e-2, atol=3e-2)
    print("KERNEL_OK")
</pallas_src>

<mosaic_0001>
module attributes {stable_mosaic.version = 11 : i64} {
  func.func @_splat_fused_kernel(%arg0: i32, %arg1: memref<2x64x576xbf16, #tpu.memory_space<vmem>>, %arg2: memref<576x128xbf16, #tpu.memory_space<vmem>>, %arg3: memref<1x128xf32, #tpu.memory_space<vmem>>, %arg4: memref<64x32xbf16, #tpu.memory_space<vmem>>, %arg5: memref<1x32xf32, #tpu.memory_space<vmem>>, %arg6: memref<32x128xbf16, #tpu.memory_space<vmem>>, %arg7: memref<1x128xf32, #tpu.memory_space<vmem>>, %arg8: memref<2x64x128xf32, #tpu.memory_space<vmem>>) attributes {dimension_semantics = [#tpu.dimension_semantics<parallel>], iteration_bounds = array<i64: 2>, scalar_prefetch = 0 : i64, scratch_operands = 0 : i64, tpu.core_type = #tpu.core_type<tc>, window_params = [{transform_indices = @transform_0, window_bounds = array<i64: 2, 64, 576>}, {pipeline_mode = #tpu.pipeline_mode<synchronous>, transform_indices = @transform_1, window_bounds = array<i64: 576, 128>}, {pipeline_mode = #tpu.pipeline_mode<synchronous>, transform_indices = @transform_2, window_bounds = array<i64: 1, 128>}, {pipeline_mode = #tpu.pipeline_mode<synchronous>, transform_indices = @transform_3, window_bounds = array<i64: 64, 32>}, {pipeline_mode = #tpu.pipeline_mode<synchronous>, transform_indices = @transform_4, window_bounds = array<i64: 1, 32>}, {pipeline_mode = #tpu.pipeline_mode<synchronous>, transform_indices = @transform_5, window_bounds = array<i64: 32, 128>}, {pipeline_mode = #tpu.pipeline_mode<synchronous>, transform_indices = @transform_6, window_bounds = array<i64: 1, 128>}, {transform_indices = @transform_7, window_bounds = array<i64: 2, 64, 128>}]} {
    %c0 = arith.constant 0 : index
    %c0_0 = arith.constant 0 : index
    %c0_1 = arith.constant 0 : index
    %0 = vector.load %arg1[%c0, %c0_0, %c0_1] : memref<2x64x576xbf16, #tpu.memory_space<vmem>>, vector<2x64x576xbf16>
    %1 = vector.shape_cast %0 : vector<2x64x576xbf16> to vector<128x576xbf16>
    %c0_2 = arith.constant 0 : index
    %c0_3 = arith.constant 0 : index
    %2 = vector.load %arg2[%c0_2, %c0_3] : memref<576x128xbf16, #tpu.memory_space<vmem>>, vector<576x128xbf16>
    %cst = arith.constant dense<0.000000e+00> : vector<128x128xf32>
    %3 = tpu.matmul %1, %2, %cst {dimension_numbers = #tpu.dot_dimension_numbers<[1], [0], [0], [1], [0, 0, 1, 1], [], []>} : vector<128x576xbf16>, vector<576x128xbf16>, vector<128x128xf32> -> vector<128x128xf32>
    %c0_4 = arith.constant 0 : index
    %c0_5 = arith.constant 0 : index
    %4 = vector.load %arg3[%c0_4, %c0_5] : memref<1x128xf32, #tpu.memory_space<vmem>>, vector<1x128xf32>
    %5 = vector.broadcast %4 : vector<1x128xf32> to vector<128x128xf32>
    %6 = arith.addf %3, %5 : vector<128x128xf32>
    %cst_6 = arith.constant 0.000000e+00 : f32
    %7 = vector.broadcast %cst_6 : f32 to vector<128x128xf32>
    %8 = arith.maximumf %6, %7 : vector<128x128xf32>
    %9 = vector.shape_cast %8 : vector<128x128xf32> to vector<2x64x128xf32>
    %cst_7 = arith.constant dense<0.000000e+00> : vector<2x128xf32>
    %10 = vector.multi_reduction <add>, %9, %cst_7 [1] : vector<2x64x128xf32> to vector<2x128xf32>
    %cst_8 = arith.constant 1.562500e-02 : f32
    %11 = vector.broadcast %cst_8 : f32 to vector<2x128xf32>
    %12 = arith.mulf %10, %11 : vector<2x128xf32>
    %13 = vector.extract_strided_slice %12 {offsets = [0, 0], sizes = [2, 64], strides = [1, 1]} : vector<2x128xf32> to vector<2x64xf32>
    %14 = vector.extract_strided_slice %12 {offsets = [0, 64], sizes = [2, 64], strides = [1, 1]} : vector<2x128xf32> to vector<2x64xf32>
    %15 = arith.addf %13, %14 : vector<2x64xf32>
    %16 = arith.truncf %15 : vector<2x64xf32> to vector<2x64xbf16>
    %c0_9 = arith.constant 0 : index
    %c0_10 = arith.constant 0 : index
    %17 = vector.load %arg4[%c0_9, %c0_10] : memref<64x32xbf16, #tpu.memory_space<vmem>>, vector<64x32xbf16>
    %cst_11 = arith.constant dense<0.000000e+00> : vector<2x32xf32>
    %18 = tpu.matmul %16, %17, %cst_11 {dimension_numbers = #tpu.dot_dimension_numbers<[1], [0], [0], [1], [0, 0, 1, 1], [], []>} : vector<2x64xbf16>, vector<64x32xbf16>, vector<2x32xf32> -> vector<2x32xf32>
    %c0_12 = arith.constant 0 : index
    %c0_13 = arith.constant 0 : index
    %19 = vector.load %arg5[%c0_12, %c0_13] : memref<1x32xf32, #tpu.memory_space<vmem>>, vector<1x32xf32>
    %20 = vector.broadcast %19 : vector<1x32xf32> to vector<2x32xf32>
    %21 = arith.addf %18, %20 : vector<2x32xf32>
    %cst_14 = arith.constant 0.000000e+00 : f32
    %22 = vector.broadcast %cst_14 : f32 to vector<2x32xf32>
    %23 = arith.maximumf %21, %22 : vector<2x32xf32>
    %24 = arith.truncf %23 : vector<2x32xf32> to vector<2x32xbf16>
    %c0_15 = arith.constant 0 : index
    %c0_16 = arith.constant 0 : index
    %25 = vector.load %arg6[%c0_15, %c0_16] : memref<32x128xbf16, #tpu.memory_space<vmem>>, vector<32x128xbf16>
    %cst_17 = arith.constant dense<0.000000e+00> : vector<2x128xf32>
    %26 = tpu.matmul %24, %25, %cst_17 {dimension_numbers = #tpu.dot_dimension_numbers<[1], [0], [0], [1], [0, 0, 1, 1], [], []>} : vector<2x32xbf16>, vector<32x128xbf16>, vector<2x128xf32> -> vector<2x128xf32>
    %c0_18 = arith.constant 0 : index
    %c0_19 = arith.constant 0 : index
    %27 = vector.load %arg7[%c0_18, %c0_19] : memref<1x128xf32, #tpu.memory_space<vmem>>, vector<1x128xf32>
    %28 = vector.broadcast %27 : vector<1x128xf32> to vector<2x128xf32>
    %29 = arith.addf %26, %28 : vector<2x128xf32>
    %c64_i32 = arith.constant 64 : i32
    %30 = tpu.dynamic_rotate %29 by %c64_i32 dim 1 : vector<2x128xf32>, i32 -> vector<2x128xf32>
    %31 = arith.maximumf %29, %30 : vector<2x128xf32>
    %32 = arith.subf %29, %31 : vector<2x128xf32>
    %33 = math.exp %32 : vector<2x128xf32>
    %c64_i32_20 = arith.constant 64 : i32
    %34 = tpu.dynamic_rotate %33 by %c64_i32_20 dim 1 : vector<2x128xf32>, i32 -> vector<2x128xf32>
    %35 = arith.addf %33, %34 : vector<2x128xf32>
    %36 = tpu.reciprocal %35 {approx = true} : vector<2x128xf32> -> vector<2x128xf32>
    %37 = arith.mulf %33, %36 : vector<2x128xf32>
    %38 = vector.shape_cast %37 : vector<2x128xf32> to vector<2x1x128xf32>
    %39 = vector.broadcast %38 : vector<2x1x128xf32> to vector<2x64x128xf32>
    %40 = arith.mulf %9, %39 : vector<2x64x128xf32>
    %c0_21 = arith.constant 0 : index
    %c0_22 = arith.constant 0 : index
    %c0_23 = arith.constant 0 : index
    %41 = vector.load %arg8[%c0_21, %c0_22, %c0_23] : memref<2x64x128xf32, #tpu.memory_space<vmem>>, vector<2x64x128xf32>
    tpu.vector_store %arg8[%c0_21, %c0_22, %c0_23], %40 {strides = array<i32>} : memref<2x64x128xf32, #tpu.memory_space<vmem>>, vector<2x64x128xf32>,
    return
  }
  func.func @transform_0(%arg0: i32) -> (i32, i32, i32) {
    %c0_i32 = arith.constant 0 : i32
    %c0_i32_0 = arith.constant 0 : i32
    %c0_i32_1 = arith.constant 0 : i32
    return %arg0, %c0_i32, %c0_i32_0 : i32, i32, i32
  }
  func.func @transform_1(%arg0: i32) -> (i32, i32) {
    %c0_i32 = arith.constant 0 : i32
    %c0_i32_0 = arith.constant 0 : i32
    %c0_i32_1 = arith.constant 0 : i32
    return %c0_i32, %c0_i32_0 : i32, i32
  }
  func.func @transform_2(%arg0: i32) -> (i32, i32) {
    %c0_i32 = arith.constant 0 : i32
    %c0_i32_0 = arith.constant 0 : i32
    %c0_i32_1 = arith.constant 0 : i32
    return %c0_i32, %c0_i32_0 : i32, i32
  }
  func.func @transform_3(%arg0: i32) -> (i32, i32) {
    %c0_i32 = arith.constant 0 : i32
    %c0_i32_0 = arith.constant 0 : i32
    %c0_i32_1 = arith.constant 0 : i32
    return %c0_i32, %c0_i32_0 : i32, i32
  }
  func.func @transform_4(%arg0: i32) -> (i32, i32) {
    %c0_i32 = arith.constant 0 : i32
    %c0_i32_0 = arith.constant 0 : i32
    %c0_i32_1 = arith.constant 0 : i32
    return %c0_i32, %c0_i32_0 : i32, i32
  }
  func.func @transform_5(%arg0: i32) -> (i32, i32) {
    %c0_i32 = arith.constant 0 : i32
    %c0_i32_0 = arith.constant 0 : i32
    %c0_i32_1 = arith.constant 0 : i32
    return %c0_i32, %c0_i32_0 : i32, i32
  }
  func.func @transform_6(%arg0: i32) -> (i32, i32) {
    %c0_i32 = arith.constant 0 : i32
    %c0_i32_0 = arith.constant 0 : i32
    %c0_i32_1 = arith.constant 0 : i32
    return %c0_i32, %c0_i32_0 : i32, i32
  }
  func.func @transform_7(%arg0: i32) -> (i32, i32, i32) {
    %c0_i32 = arith.constant 0 : i32
    %c0_i32_0 = arith.constant 0 : i32
    %c0_i32_1 = arith.constant 0 : i32
    return %arg0, %c0_i32, %c0_i32_0 : i32, i32, i32
  }
}

</mosaic_0001>

<bundles_post_ra>
// kernel: split_attention_forward.1
= control target key start
LH: loop header
LB: loop body
LE: loop exit
PB: predicated region body
PF: predicated region fallthrough
CT: control target
= control target key end

     0   :  { %s1963_s24 = smov 0   ;;  %s2373_s0 = inlined_call_operand.vmem [shape: bf16[4,64,576], index: 0, kind: input, shape index: {}]   ;;  %s2374_s1 = inlined_call_operand.vmem [shape: bf16[576,128], index: 1, kind: input, shape index: {}]   ;;  %s2375_s2 = inlined_call_operand.vmem [shape: f32[1,128], index: 2, kind: input, shape index: {}]   ;;  %s2376_s3 = inlined_call_operand.vmem [shape: bf16[64,32], index: 3, kind: input, shape index: {}]   ;;  %s2377_s4 = inlined_call_operand.vmem [shape: f32[1,32], index: 4, kind: input, shape index: {}]   ;;  %s2378_s5 = inlined_call_operand.vmem [shape: bf16[32,128], index: 5, kind: input, shape index: {}]   ;;  %s2379_s6 = inlined_call_operand.vmem [shape: f32[1,128], index: 6, kind: input, shape index: {}]   ;;  %s2380_s7 = inlined_call_operand.vmem [shape: f32[4,64,128], index: 7, kind: output, shape index: {}]  }
   0x1 LB: > { %s1496_s25 = sadd.s32 4294967295, %s1917_s24   ;;  %p1500_p0 = scmp.ge.s32.totalorder %s1917_s24, 1  ;;  %s1917_s24 = sphi %s1963_s24, %s17_s24  }
   0x2   : > { %p239_p1 = scmp.lt.s32.totalorder %s1917_s24, 3 }
   0x4   : > { %p240_p2 = pnand %p1500_p0, %p239_p1 }
   0x5   : > { %v1809_v0 = vld [vmem:[%s2374_s1 + $0x40] sm:$0xff] (!%p240_p2)   ;;  %v1813_v4 = vld [vmem:[%s2374_s1 + $0x48] sm:$0xff] (!%p240_p2)   ;;  %v1817_v8 = vld [vmem:[%s2374_s1 + $0x50] sm:$0xff] (!%p240_p2)   ;;  %s1501_s10 = sshll.u32 (!%p240_p2), %s1496_s25, 1  ;;  %vm831_vm0 = vcmask (!%p240_p2), 523264   ;;  %vm1920_vm1 = vmmov (!%p240_p2), 0  }
   0x6   : > { %243 = sbr.rel (%p240_p2) target bundleno = 1204 (0x4b4), region = 48  ;;  %v1810_v1 = vld [vmem:[%s2374_s1] sm:$0xff] (!%p240_p2)   ;;  %1604 = vmatprep.subr.bf16.mxu0 (!%p240_p2), %v1809_v0  ;;  %v1814_v5 = vld [vmem:[%s2374_s1 + $0x8] sm:$0xff] (!%p240_p2)   ;;  %v1818_v9 = vld [vmem:[%s2374_s1 + $0x10] sm:$0xff] (!%p240_p2)   ;;  %p274_p3 = scmp.lt.s32.totalorder (!%p240_p2), %s1501_s10, 3  ;;  %vm1223_vm2 = vcmask (!%p240_p2), 1041409  }
   0x7   : > { %v1811_v2 = vld [vmem:[%s2374_s1 + $0xc0] sm:$0xff] (!%p240_p2)   ;;  %1605 = vmatpush3.bf16.msra.mxu0 (!%p240_p2), %v1810_v1  ;;  %v1815_v6 = vld [vmem:[%s2374_s1 + $0xc8] sm:$0xff] (!%p240_p2)   ;;  %v1819_v10 = vld [vmem:[%s2374_s1 + $0xd0] sm:$0xff] (!%p240_p2)   ;;  %s1921_s28 = smov (!%p240_p2), 64   ;;  %vm1318_vm3 = vcmask (!%p240_p2), 261120  }
   0x8   : > { %v1812_v3 = vld [vmem:[%s2374_s1 + $0x80] sm:$0xff] (!%p240_p2)   ;;  %1668 = vmatprep.subr.bf16.mxu1 (!%p240_p2), %v1811_v2  ;;  %1606 = vmatprep.subr.bf16.mxu0 (!%p240_p2), %v1813_v4  ;;  %v1816_v7 = vld [vmem:[%s2374_s1 + $0x88] sm:$0xff] (!%p240_p2)   ;;  %v1820_v11 = vld [vmem:[%s2374_s1 + $0x90] sm:$0xff] (!%p240_p2)  }
   0x9   : > { %1669 = vmatpush3.bf16.msra.mxu1 (!%p240_p2), %v1812_v3  ;;  %v1821_v12 = vld [vmem:[%s2374_s1 + $0x58] sm:$0xff] (!%p240_p2)   ;;  %v1825_v16 = vld [vmem:[%s2374_s1 + $0x60] sm:$0xff] (!%p240_p2)   ;;  %v1829_v20 = vld [vmem:[%s2374_s1 + $0x68] sm:$0xff] (!%p240_p2)  }
   0xa   : > { %1670 = vmatprep.subr.bf16.mxu1 (!%p240_p2), %v1815_v6  ;;  %v1822_v13 = vld [vmem:[%s2374_s1 + $0x18] sm:$0xff] (!%p240_p2)   ;;  %v1826_v17 = vld [vmem:[%s2374_s1 + $0x20] sm:$0xff] (!%p240_p2)   ;;  %v1830_v21 = vld [vmem:[%s2374_s1 + $0x28] sm:$0xff] (!%p240_p2)  }
   0xb   : > { %1607 = vmatpush3.bf16.msra.mxu0 (!%p240_p2), %v1814_v5  ;;  %v1823_v14 = vld [vmem:[%s2374_s1 + $0xd8] sm:$0xff] (!%p240_p2)   ;;  %v1827_v18 = vld [vmem:[%s2374_s1 + $0xe0] sm:$0xff] (!%p240_p2)   ;;  %v1831_v22 = vld [vmem:[%s2374_s1 + $0xe8] sm:$0xff] (!%p240_p2)  }
   0xc   : > { %1608 = vmatprep.subr.bf16.mxu0 (!%p240_p2), %v1817_v8  ;;  %v1824_v15 = vld [vmem:[%s2374_s1 + $0x98] sm:$0xff] (!%p240_p2)   ;;  %v1828_v19 = vld [vmem:[%s2374_s1 + $0xa0] sm:$0xff] (!%p240_p2)   ;;  %v1832_v23 = vld [vmem:[%s2374_s1 + $0xa8] sm:$0xff] (!%p240_p2)  }
   0xd   : > { %1671 = vmatpush3.bf16.msra.mxu1 %v1816_v7  ;;  %s2382_s10 = smov (!%p274_p3, %s1501_s10), 3  ;;  %v1833_v24 = vld [vmem:[%s2374_s1 + $0x70] sm:$0xff]   ;;  %v1837_v28 = vld [vmem:[%s2374_s1 + $0x78] sm:$0xff]   ;;  %v1844_v34 = vld [vmem:[%s2374_s1 + $0x100] sm:$0xff]  }
   0xe   : > { %1672 = vmatprep.subr.bf16.mxu1 %v1819_v10  ;;  %s1796_s12 = smul.u32 160, %s2382_s10  ;;  %v1834_v25 = vld [vmem:[%s2374_s1 + $0x30] sm:$0xff]   ;;  %v1838_v29 = vld [vmem:[%s2374_s1 + $0x38] sm:$0xff]   ;;  %v1857_v41 = vld [vmem:[%s2374_s1 + $0x108] sm:$0xff]   ;;  %s1603_s15 = sshll.u32 %s2382_s10, 6 }
   0xf   : > { %1609 = vmatpush3.bf16.msra.mxu0 %v1818_v9  ;;  %v1835_v26 = vld [vmem:[%s2374_s1 + $0xf0] sm:$0xff]   ;;  %v1839_v30 = vld [vmem:[%s2374_s1 + $0xf8] sm:$0xff]   ;;  %s2320_s18 = scalar_lea.vmem %s2380_s7, %s1603_s15 }
  0x10   : > { %1610 = vmatprep.subr.bf16.mxu0 %v1821_v12  ;;  %v1836_v27 = vld [vmem:[%s2374_s1 + $0xb0] sm:$0xff]   ;;  %s2066_s22 = scalar_lea.vmem %s2373_s0, %s1796_s12  ;;  %v1843_v33 = vld [vmem:[%s2374_s1 + $0xb8] sm:$0xff]   ;;  %v1901_v12 = vld [vmem:[%s2376_s3] sm:$0xff]  }
  0x11   : > { %1673 = vmatpush3.bf16.msra.mxu1 %v1820_v11  ;;  %v1840_v31 = vld [vmem:[%s2066_s22] ss:$20 sps:$4 sm:$0xff]   ;;  %v1842_v32 = vld [vmem:[%s2066_s22 + $0x4] ss:$20 sps:$4 sm:$0xff]   ;;  %v1845_v35 = vld [vmem:[%s2066_s22 + $0x8] ss:$20 sps:$4 sm:$0xff]  }
  0x12   : > { %1674 = vmatprep.subr.bf16.mxu1 %v1823_v14  ;;  %888 = vmatprep.mubr.bf16.mxu0 %v1842_v32  ;;  %v1847_v36 = vld [vmem:[%s2066_s22 + $0xc] ss:$20 sps:$4 sm:$0xff]   ;;  %v1851_v38 = vld [vmem:[%s2066_s22 + $0x34] ss:$20 sps:$4 sm:$0xff]   ;;  %v1853_v42 = vld [vmem:[%s2066_s22 + $0x30] ss:$20 sps:$4 sm:$0xff]  }
  0x13   : > { %1611 = vmatpush3.bf16.msra.mxu0 %v1822_v13  ;;  %v1848_v37 = vld [vmem:[%s2066_s22 + $0x2c] ss:$20 sps:$4 sm:$0xff]   ;;  %985 = vmatprep.mubr.bf16.mxu1 %v1847_v36  ;;  %v1850_v39 = vld [vmem:[%s2066_s22 + $0x28] ss:$20 sps:$4 sm:$0xff]   ;;  %v1870_v44 = vld [vmem:[%s2374_s1 + $0x110] sm:$0xff]   ;;  %v1919_v13 = vmov 0.0  }
  0x14   : > { %1612 = vmatprep.subr.bf16.mxu0 %v1825_v16  ;;  %v1854_v40 = vld [vmem:[%s2066_s22 + $0x54] ss:$20 sps:$4 sm:$0xff]   ;;  %v1858_v43 = vld [vmem:[%s2066_s22 + $0x5c] ss:$20 sps:$4 sm:$0xff]   ;;  %v1860_v47 = vld [vmem:[%s2066_s22 + $0x58] ss:$20 sps:$4 sm:$0xff]  }
  0x15   : > { %1675 = vmatpush3.bf16.msra.mxu1 %v1824_v15  ;;  %v1856_v45 = vld [vmem:[%s2066_s22 + $0x50] ss:$20 sps:$4 sm:$0xff]   ;;  %v1883_v49 = vld [vmem:[%s2374_s1 + $0x118] sm:$0xff]   ;;  %v1866_v52 = vld [vmem:[%s2066_s22 + $0x80] ss:$20 sps:$4 sm:$0xff]  }
  0x16   : > { %1676 = vmatprep.subr.bf16.mxu1 %v1827_v18  ;;  %v1861_v46 = vld [vmem:[%s2066_s22 + $0x7c] ss:$20 sps:$4 sm:$0xff]   ;;  %v1864_v48 = vld [vmem:[%s2066_s22 + $0x84] ss:$20 sps:$4 sm:$0xff]   ;;  %v1871_v53 = vld [vmem:[%s2066_s22 + $0xac] ss:$20 sps:$4 sm:$0xff]  }
  0x17   : > { %1613 = vmatpush3.bf16.msra.mxu0 %v1826_v17  ;;  %v1863_v50 = vld [vmem:[%s2066_s22 + $0x78] ss:$20 sps:$4 sm:$0xff]   ;;  %v1869_v54 = vld [vmem:[%s2066_s22 + $0xa0] ss:$20 sps:$4 sm:$0xff]   ;;  %v1873_v55 = vld [vmem:[%s2066_s22 + $0xa8] ss:$20 sps:$4 sm:$0xff]  }
  0x18   : > { %1614 = vmatprep.subr.bf16.mxu0 %v1829_v20  ;;  %v1867_v51 = vld [vmem:[%s2066_s22 + $0xa4] ss:$20 sps:$4 sm:$0xff]   ;;  %v1874_v56 = vld [vmem:[%s2066_s22 + $0xcc] ss:$20 sps:$4 sm:$0xff]   ;;  %v1877_v57 = vld [vmem:[%s2066_s22 + $0xd4] ss:$20 sps:$4 sm:$0xff]  }
  0x19   : > { %1677 = vmatpush3.bf16.msra.mxu1 %v1828_v19  ;;  %v1876_v58 = vld [vmem:[%s2066_s22 + $0xc8] ss:$20 sps:$4 sm:$0xff]   ;;  %v1879_v60 = vld [vmem:[%s2066_s22 + $0xd0] ss:$20 sps:$4 sm:$0xff]   ;;  %v1886_v0 = vld [vmem:[%s2066_s22 + $0xf8] ss:$20 sps:$4 sm:$0xff]  }
  0x1a   : > { %1678 = vmatprep.subr.bf16.mxu1 %v1831_v22  ;;  %v1880_v59 = vld [vmem:[%s2066_s22 + $0xf4] ss:$20 sps:$4 sm:$0xff]   ;;  %v1884_v61 = vld [vmem:[%s2066_s22 + $0xfc] ss:$20 sps:$4 sm:$0xff]   ;;  %v1890_v1 = vld [vmem:[%s2066_s22 + $0x124] ss:$20 sps:$4 sm:$0xff]  }
  0x1b   : > { %1615 = vmatpush3.bf16.msra.mxu0 %v1830_v21  ;;  %v1882_v62 = vld [vmem:[%s2066_s22 + $0xf0] ss:$20 sps:$4 sm:$0xff]   ;;  %v1889_v2 = vld [vmem:[%s2066_s22 + $0x118] ss:$20 sps:$4 sm:$0xff]   ;;  %v1892_v4 = vld [vmem:[%s2066_s22 + $0x120] ss:$20 sps:$4 sm:$0xff]  }
  0x1c   : > { %1616 = vmatprep.subr.bf16.mxu0 %v1833_v24  ;;  %v1887_v63 = vld [vmem:[%s2066_s22 + $0x11c] ss:$20 sps:$4 sm:$0xff]   ;;  %v1894_v5 = vld [vmem:[%s2066_s22 + $0x38] ss:$20 sps:$4 sm:$0xff]   ;;  %v1895_v6 = vld [vmem:[%s2066_s22 + $0x60] ss:$20 sps:$4 sm:$0xff]  }
  0x1d   : > { %1679 = vmatpush3.bf16.msra.mxu1 %v1832_v23  ;;  %v1893_v3 = vld [vmem:[%s2066_s22 + $0x10] ss:$20 sps:$4 sm:$0xff]   ;;  %v1896_v7 = vld [vmem:[%s2066_s22 + $0x88] ss:$20 sps:$4 sm:$0xff]   ;;  %v1898_v9 = vld [vmem:[%s2066_s22 + $0xd8] ss:$20 sps:$4 sm:$0xff]  }
  0x1e   : > { %1680 = vmatprep.subr.bf16.mxu1 %v1835_v26  ;;  %v1897_v8 = vld [vmem:[%s2066_s22 + $0xb0] ss:$20 sps:$4 sm:$0xff]   ;;  %v1899_v10 = vld [vmem:[%s2066_s22 + $0x100] ss:$20 sps:$4 sm:$0xff]   ;;  %v1900_v11 = vld [vmem:[%s2066_s22 + $0x128] ss:$20 sps:$4 sm:$0xff]  }
  0x1f   : > { %1617 = vmatpush3.bf16.msra.mxu0 %v1834_v25  ;;  %v1902_v14 = vld [vmem:[%s2376_s3 + $0x8] sm:$0xff]   ;;  %v1903_v15 = vld [vmem:[%s2376_s3 + $0x10] sm:$0xff]   ;;  %v2152_v17 = vld [vmem:[%s2375_s2] ss:$0 sm:$0xff] }
  0x20   : > { %1618 = vmatprep.subr.bf16.mxu0 %v1837_v28  ;;  %v1904_v21 = vld [vmem:[%s2376_s3 + $0x18] sm:$0xff]  }
  0x21   : > { %1681 = vmatpush3.bf16.msra.mxu1 %v1836_v27 }
  0x22   : > { %1682 = vmatprep.subr.bf16.mxu1 %v1839_v30 }
  0x23   : > { %1619 = vmatpush3.bf16.msra.mxu0 %v1838_v29 }
  0x24   : > { %1752 = vmatprep.subr.bf16.mxu0 %v1844_v34 }
  0x25   : > { %1683 = vmatpush3.bf16.msra.mxu1 %v1843_v33 }
  0x26   : > { %889 = vmatmul.mubr.bf16.vlgmr.msra.gmra.mrb[0].mxu0 %v1840_v31  ;;  %1776 = vmatprep.subr.bf16.mxu1 %v1919_v13 }
  0x27   : > { %1753 = vmatpush3.bf16.msra.mxu0 %v1844_v34  ;;  %896 = vmatprep.mubr.bf16.mxu0 %v1848_v37 }
  0x28   : > { %986 = vmatmul.mubr.bf16.vlgmr.msra.gmra.mrb[0].mxu1 %v1845_v35  ;;  %1754 = vmatprep.subr.bf16.mxu0 %v1857_v41 }
  0x29   : > { %993 = vmatprep.mubr.bf16.mxu1 %v1851_v38  ;;  %1777 = vmatpush3.bf16.msra.mxu1 %v1901_v12 }
  0x2a   : > { %1778 = vmatprep.subr.bf16.mxu1 %v1919_v13 }
  0x2b   : > { %1755 = vmatpush3.bf16.msra.mxu0 %v1857_v41 }
  0x2c   : > { %1756 = vmatprep.subr.bf16.mxu0 %v1870_v44 }
  0x2d   : > { %1779 = vmatpush3.bf16.msra.mxu1 %v1902_v14 }
  0x2e   : > { %897 = vmatmul.mubr.bf16.gmra.mrb[4].mxu0 %v1850_v39  ;;  %1780 = vmatprep.subr.bf16.mxu1 %v1919_v13 }
  0x2f   : > { %904 = vmatprep.mubr.bf16.mxu0 %v1854_v40  ;;  %1757 = vmatpush3.bf16.msra.mxu0 %v1870_v44 }
  0x30   : > { %994 = vmatmul.mubr.bf16.gmra.mrb[4].mxu1 %v1853_v42  ;;  %1758 = vmatprep.subr.bf16.mxu0 %v1883_v49 }
  0x31   : > { %1001 = vmatprep.mubr.bf16.mxu1 %v1858_v43  ;;  %1781 = vmatpush3.bf16.msra.mxu1 %v1903_v15 }
  0x32   : > { %1782 = vmatprep.subr.bf16.mxu1 %v1919_v13 }
  0x33   : > { %1759 = vmatpush3.bf16.msra.mxu0 %v1883_v49 }
  0x35   : > { %1783 = vmatpush3.bf16.msra.mxu1 %v1904_v21 }
  0x36   : > { %905 = vmatmul.mubr.bf16.gmra.mrb[8].mxu0 %v1856_v45  ;;  %1788 = vmatprep.subr.bf16.mxu1 %v1919_v13 }
  0x37   : > { %912 = vmatprep.mubr.bf16.mxu0 %v1861_v46 }
  0x38   : > { %1002 = vmatmul.mubr.bf16.gmra.mrb[8].mxu1 %v1860_v47 }
  0x39   : > { %1009 = vmatprep.mubr.bf16.mxu1 %v1864_v48 }
  0x3e   : > { %913 = vmatmul.mubr.bf16.gmra.mrb[12].mxu0 %v1863_v50 }
  0x3f   : > { %920 = vmatprep.mubr.bf16.mxu0 %v1867_v51 }
  0x40   : > { %1010 = vmatmul.mubr.bf16.gmra.mrb[12].mxu1 %v1866_v52 }
  0x41   : > { %1017 = vmatprep.mubr.bf16.mxu1 %v1871_v53 }
  0x46   : > { %921 = vmatmul.mubr.bf16.gmra.mrb[16].mxu0 %v1869_v54 }
  0x47   : > { %928 = vmatprep.mubr.bf16.mxu0 %v1874_v56 }
  0x48   : > { %1018 = vmatmul.mubr.bf16.gmra.mrb[16].mxu1 %v1873_v55 }
  0x49   : > { %1025 = vmatprep.mubr.bf16.mxu1 %v1877_v57 }
  0x4e   : > { %929 = vmatmul.mubr.bf16.gmra.mrb[20].mxu0 %v1876_v58 }
  0x4f   : > { %936 = vmatprep.mubr.bf16.mxu0 %v1880_v59 }
  0x50   : > { %1026 = vmatmul.mubr.bf16.gmra.mrb[20].mxu1 %v1879_v60 }
  0x51   : > { %1033 = vmatprep.mubr.bf16.mxu1 %v1884_v61 }
  0x56   : > { %937 = vmatmul.mubr.bf16.gmra.mrb[24].mxu0 %v1882_v62 }
  0x57   : > { %944 = vmatprep.mubr.bf16.mxu0 %v1887_v63 }
  0x58   : > { %1034 = vmatmul.mubr.bf16.gmra.mrb[24].mxu1 %v1886_v0 }
  0x59   : > { %1041 = vmatprep.mubr.bf16.mxu1 %v1890_v1 }
  0x5e   : > { %945 = vmatmul.mubr.bf16.gmra.mrb[28].mxu0 %v1889_v2 }
  0x5f   : > { %1760 = vmatprep.mubr.msk.bf16.mxu0 %vm831_vm0, %v1893_v3 }
  0x60   : > { %1042 = vmatmul.mubr.bf16.gmra.mrb[28].mxu1 %v1892_v4 }
  0x61   : > { %1784 = vmatprep.mubr.msk.bf16.mxu1 %vm1920_vm1, %v1919_v13 }
  0x66   : > { %1761 = vmatmul.mubr.msk.bf16.vlgmr.msra.gmra.mrb[32].mxu0 %vm831_vm0, %v1894_v5 }
  0x67   : > { %1764 = vmatprep.mubr.msk.bf16.mxu0 %vm831_vm0, %v1895_v6 }
  0x6e   : > { %1765 = vmatmul.mubr.msk.bf16.gmra.mrb[36].mxu0 %vm831_vm0, %v1896_v7 }
  0x6f   : > { %1768 = vmatprep.mubr.msk.bf16.mxu0 %vm831_vm0, %v1897_v8 }
  0x76   : > { %1769 = vmatmul.mubr.msk.bf16.gmra.mrb[40].mxu0 %vm831_vm0, %v1898_v9 }
  0x77   : > { %1772 = vmatprep.mubr.msk.bf16.mxu0 %vm831_vm0, %v1899_v10 }
  0x7e   : > { %1773 = vmatmul.mubr.msk.bf16.gmra.mrb[44].mxu0 %vm831_vm0, %v1900_v11 }
  0xf9   : > { %v1620_v16 = vpop.f32.mrb[0].mxu0 }
  0xfa   : > { %v1621_v18 = vpop.f32.mrb[1].mxu0 }
  0xfb   : > { %v1622_v19 = vadd.f32 %v1621_v18, %v1620_v16  ;;  %v1623_v20 = vpop.f32.mrb[2].mxu0  ;;  %v1684_v22 = vpop.f32.mrb[0].mxu1 }
  0xfc   : > { %v1624_v23 = vpop.f32.mrb[3].mxu0  ;;  %v1685_v26 = vpop.f32.mrb[1].mxu1 }
  0xfd   : > { %v891_v24 = vadd.f32 %v1622_v19, %v2152_v17  ;;  %v1625_v25 = vadd.f32 %v1624_v23, %v1623_v20  ;;  %v1686_v27 = vadd.f32 %v1685_v26, %v1684_v22  ;;  %v1687_v28 = vpop.f32.mrb[2].mxu1 }
  0xfe   : > { %v1688_v30 = vpop.f32.mrb[3].mxu1 }
  0xff   : > { %v894_v29 = vadd.f32 %v1625_v25, %v2152_v17  ;;  %v1689_v31 = vadd.f32 %v1688_v30, %v1687_v28  ;;  %v2160_v32 = vadd.f32 %v1686_v27, %v891_v24 }
 0x101   : > { %v1626_v33 = vpop.f32.mrb[4].mxu0  ;;  %v2163_v35 = vadd.f32 %v1689_v31, %v894_v29 }
 0x102   : > { %v1627_v34 = vpop.f32.mrb[5].mxu0 }
 0x103   : > { %v1628_v36 = vadd.f32 %v1627_v34, %v1626_v33  ;;  %v1629_v37 = vpop.f32.mrb[6].mxu0  ;;  %v1690_v38 = vpop.f32.mrb[4].mxu1 }
 0x104   : > { %v1630_v39 = vpop.f32.mrb[7].mxu0  ;;  %v1691_v42 = vpop.f32.mrb[5].mxu1 }
 0x105   : > { %v899_v40 = vadd.f32 %v1628_v36, %v2152_v17  ;;  %v1631_v41 = vadd.f32 %v1630_v39, %v1629_v37  ;;  %v1692_v43 = vadd.f32 %v1691_v42, %v1690_v38  ;;  %v1693_v44 = vpop.f32.mrb[6].mxu1 }
 0x106   : > { %v1694_v46 = vpop.f32.mrb[7].mxu1 }
 0x107   : > { %v902_v45 = vadd.f32 %v1631_v41, %v2152_v17  ;;  %v1695_v47 = vadd.f32 %v1694_v46, %v1693_v44  ;;  %v2167_v48 = vadd.f32 %v1692_v43, %v899_v40 }
 0x109   : > { %v1632_v49 = vpop.f32.mrb[8].mxu0  ;;  %v2169_v51 = vadd.f32 %v1695_v47, %v902_v45 }
 0x10a   : > { %v1633_v50 = vpop.f32.mrb[9].mxu0 }
 0x10b   : > { %v1634_v52 = vadd.f32 %v1633_v50, %v1632_v49  ;;  %v1635_v53 = vpop.f32.mrb[10].mxu0  ;;  %v1696_v54 = vpop.f32.mrb[8].mxu1 }
 0x10c   : > { %v1636_v55 = vpop.f32.mrb[11].mxu0  ;;  %v1697_v58 = vpop.f32.mrb[9].mxu1 }
 0x10d   : > { %v907_v56 = vadd.f32 %v1634_v52, %v2152_v17  ;;  %v1637_v57 = vadd.f32 %v1636_v55, %v1635_v53  ;;  %v1698_v59 = vadd.f32 %v1697_v58, %v1696_v54  ;;  %v1699_v60 = vpop.f32.mrb[10].mxu1 }
 0x10e   : > { %v1700_v62 = vpop.f32.mrb[11].mxu1 }
 0x10f   : > { %v910_v61 = vadd.f32 %v1637_v57, %v2152_v17  ;;  %v1701_v63 = vadd.f32 %v1700_v62, %v1699_v60  ;;  %v2173_v0 = vadd.f32 %v1698_v59, %v907_v56 }
 0x111   : > { %v1638_v1 = vpop.f32.mrb[12].mxu0  ;;  %v2175_v3 = vadd.f32 %v1701_v63, %v910_v61 }
 0x112   : > { %v1639_v2 = vpop.f32.mrb[13].mxu0 }
 0x113   : > { %v1640_v4 = vadd.f32 %v1639_v2, %v1638_v1  ;;  %v1641_v5 = vpop.f32.mrb[14].mxu0  ;;  %v1702_v6 = vpop.f32.mrb[12].mxu1 }
 0x114   : > { %v1642_v7 = vpop.f32.mrb[15].mxu0  ;;  %v1703_v10 = vpop.f32.mrb[13].mxu1 }
 0x115   : > { %v915_v8 = vadd.f32 %v1640_v4, %v2152_v17  ;;  %v1643_v9 = vadd.f32 %v1642_v7, %v1641_v5  ;;  %v1704_v11 = vadd.f32 %v1703_v10, %v1702_v6  ;;  %v1705_v12 = vpop.f32.mrb[14].mxu1 }
 0x116   : > { %v1706_v15 = vpop.f32.mrb[15].mxu1 }
 0x117   : > { %v918_v14 = vadd.f32 %v1643_v9, %v2152_v17  ;;  %v1707_v16 = vadd.f32 %v1706_v15, %v1705_v12  ;;  %v2179_v18 = vadd.f32 %v1704_v11, %v915_v8 }
 0x119   : > { %v1644_v19 = vpop.f32.mrb[16].mxu0  ;;  %v2181_v21 = vadd.f32 %v1707_v16, %v918_v14 }
 0x11a   : > { %v1645_v20 = vpop.f32.mrb[17].mxu0 }
 0x11b   : > { %v1646_v22 = vadd.f32 %v1645_v20, %v1644_v19  ;;  %v1647_v23 = vpop.f32.mrb[18].mxu0  ;;  %v1708_v24 = vpop.f32.mrb[16].mxu1 }
 0x11c   : > { %v1648_v25 = vpop.f32.mrb[19].mxu0  ;;  %v1709_v28 = vpop.f32.mrb[17].mxu1 }
 0x11d   : > { %v923_v26 = vadd.f32 %v1646_v22, %v2152_v17  ;;  %v1649_v27 = vadd.f32 %v1648_v25, %v1647_v23  ;;  %v1710_v29 = vadd.f32 %v1709_v28, %v1708_v24  ;;  %v1711_v30 = vpop.f32.mrb[18].mxu1 }
 0x11e   : > { %v1712_v33 = vpop.f32.mrb[19].mxu1 }
 0x11f   : > { %v926_v31 = vadd.f32 %v1649_v27, %v2152_v17  ;;  %v1713_v34 = vadd.f32 %v1712_v33, %v1711_v30  ;;  %v2185_v36 = vadd.f32 %v1710_v29, %v923_v26 }
 0x121   : > { %v1650_v37 = vpop.f32.mrb[20].mxu0  ;;  %v2187_v39 = vadd.f32 %v1713_v34, %v926_v31 }
 0x122   : > { %v1651_v38 = vpop.f32.mrb[21].mxu0 }
 0x123   : > { %v1652_v40 = vadd.f32 %v1651_v38, %v1650_v37  ;;  %v1653_v41 = vpop.f32.mrb[22].mxu0  ;;  %v1714_v42 = vpop.f32.mrb[20].mxu1 }
 0x124   : > { %v1654_v43 = vpop.f32.mrb[23].mxu0  ;;  %v1715_v46 = vpop.f32.mrb[21].mxu1 }
 0x125   : > { %v931_v44 = vadd.f32 %v1652_v40, %v2152_v17  ;;  %v1655_v45 = vadd.f32 %v1654_v43, %v1653_v41  ;;  %v1716_v47 = vadd.f32 %v1715_v46, %v1714_v42  ;;  %v1717_v49 = vpop.f32.mrb[22].mxu1 }
 0x126   : > { %v1718_v52 = vpop.f32.mrb[23].mxu1 }
 0x127   : > { %v934_v50 = vadd.f32 %v1655_v45, %v2152_v17  ;;  %v1719_v53 = vadd.f32 %v1718_v52, %v1717_v49  ;;  %v1028_v54 = vadd.f32 %v1716_v47, %v931_v44 }
 0x129   : > { %v1656_v55 = vpop.f32.mrb[24].mxu0  ;;  %v2191_v57 = vadd.f32 %v1719_v53, %v934_v50 }
 0x12a   : > { %v1657_v56 = vpop.f32.mrb[25].mxu0 }
 0x12b   : > { %v1658_v58 = vadd.f32 %v1657_v56, %v1656_v55  ;;  %v1659_v59 = vpop.f32.mrb[26].mxu0  ;;  %v1720_v60 = vpop.f32.mrb[24].mxu1 }
 0x12c   : > { %v1660_v61 = vpop.f32.mrb[27].mxu0  ;;  %v1721_v1 = vpop.f32.mrb[25].mxu1 }
 0x12d   : > { %v939_v62 = vadd.f32 %v1658_v58, %v2152_v17  ;;  %v1661_v63 = vadd.f32 %v1660_v61, %v1659_v59  ;;  %v1722_v2 = vadd.f32 %v1721_v1, %v1720_v60  ;;  %v1723_v4 = vpop.f32.mrb[26].mxu1 }
 0x12e   : > { %v1724_v6 = vpop.f32.mrb[27].mxu1 }
 0x12f   : > { %v942_v5 = vadd.f32 %v1661_v63, %v2152_v17  ;;  %v1725_v7 = vadd.f32 %v1724_v6, %v1723_v4  ;;  %v2195_v8 = vadd.f32 %v1722_v2, %v939_v62 }
 0x131   : > { %v1662_v9 = vpop.f32.mrb[28].mxu0  ;;  %v2197_v11 = vadd.f32 %v1725_v7, %v942_v5 }
 0x132   : > { %v1663_v10 = vpop.f32.mrb[29].mxu0 }
 0x133   : > { %v1664_v12 = vadd.f32 %v1663_v10, %v1662_v9  ;;  %v1665_v14 = vpop.f32.mrb[30].mxu0  ;;  %v1726_v15 = vpop.f32.mrb[28].mxu1 }
 0x134   : > { %v1666_v16 = vpop.f32.mrb[31].mxu0  ;;  %v1727_v22 = vpop.f32.mrb[29].mxu1 }
 0x135   : > { %v947_v19 = vadd.f32 %v1664_v12, %v2152_v17  ;;  %v1667_v20 = vadd.f32 %v1666_v16, %v1665_v14  ;;  %v1728_v23 = vadd.f32 %v1727_v22, %v1726_v15  ;;  %v1729_v24 = vpop.f32.mrb[30].mxu1 }
 0x136   : > { %v1730_v26 = vpop.f32.mrb[31].mxu1 }
 0x137   : > { %v950_v25 = vadd.f32 %v1667_v20, %v2152_v17  ;;  %v1731_v27 = vadd.f32 %v1730_v26, %v1729_v24  ;;  %v1044_v28 = vadd.f32 %v1728_v23, %v947_v19 }
 0x139   : > { %v1762_v29 = vpop.f32.mrb[32].mxu0  ;;  %v1047_v33 = vadd.f32 %v1731_v27, %v950_v25 }
 0x13a   : > { %v2202_v30 = vadd.f32 %v1762_v29, %v2167_v48  ;;  %v1084_v31 = vpop.f32.mrb[33].mxu0 }
 0x13b   : > { %v2205_v34 = vadd.f32 %v1084_v31, %v2160_v32  ;;  %v1763_v37 = vpop.f32.mrb[34].mxu0 }
 0x13c   : > { %v2208_v38 = vadd.f32 %v1763_v37, %v2169_v51  ;;  %v1087_v40 = vpop.f32.mrb[35].mxu0  ;;  %v1149_v48 = vmax.f32 %v2202_v30, 0.0 }
 0x13d   : > { %v2211_v41 = vadd.f32 %v1087_v40, %v2163_v35  ;;  %v1147_v17 = vmax.f32 %v2205_v34, 0.0 }
 0x13e   : > { %v1150_v45 = vmax.f32 %v2208_v38, 0.0 }
 0x13f   : > { %v1148_v42 = vmax.f32 %v2211_v41, 0.0 }
 0x141   : > { %v1163_v32 = vadd.f32 %v1148_v42, %v1147_v17  ;;  %v1766_v43 = vpop.f32.mrb[36].mxu0 }
 0x142   : > { %v2221_v44 = vadd.f32 %v1766_v43, %v2179_v18  ;;  %v1100_v51 = vpop.f32.mrb[37].mxu0 }
 0x143   : > { %v1164_v35 = vadd.f32 %v1163_v32, %v1149_v48  ;;  %v2227_v46 = vadd.f32 %v1100_v51, %v2173_v0  ;;  %v1767_v47 = vpop.f32.mrb[38].mxu0 }
 0x144   : > { %v2230_v49 = vadd.f32 %v1767_v47, %v2181_v21  ;;  %v1103_v50 = vpop.f32.mrb[39].mxu0  ;;  %v1153_v63 = vmax.f32 %v2221_v44, 0.0 }
 0x145   : > { %v1151_v52 = vmax.f32 %v2227_v46, 0.0  ;;  %v1165_v18 = vadd.f32 %v1164_v35, %v1150_v45  ;;  %v2236_v53 = vadd.f32 %v1103_v50, %v2175_v3 }
 0x147   : > { %v1166_v55 = vadd.f32 %v1165_v18, %v1151_v52  ;;  %v1152_v56 = vmax.f32 %v2236_v53, 0.0 }
 0x149   : > { %v1770_v0 = vpop.f32.mrb[40].mxu0  ;;  %v1167_v21 = vadd.f32 %v1166_v55, %v1152_v56 }
 0x14a   : > { %v2241_v58 = vadd.f32 %v1770_v0, %v1028_v54  ;;  %v1116_v59 = vpop.f32.mrb[41].mxu0 }
 0x14b   : > { %v2246_v60 = vadd.f32 %v1116_v59, %v2185_v36  ;;  %v1771_v61 = vpop.f32.mrb[42].mxu0  ;;  %v1168_v54 = vadd.f32 %v1167_v21, %v1153_v63  ;;  %v1154_v36 = vmax.f32 %v2230_v49, 0.0 }
 0x14c   : > { %v2249_v62 = vadd.f32 %v1771_v61, %v2191_v57  ;;  %v1119_v3 = vpop.f32.mrb[43].mxu0  ;;  %v1157_v5 = vmax.f32 %v2241_v58, 0.0 }
 0x14d   : > { %v2253_v1 = vadd.f32 %v1119_v3, %v2187_v39  ;;  %v1155_v2 = vmax.f32 %v2246_v60, 0.0  ;;  %v1169_v9 = vadd.f32 %v1168_v54, %v1154_v36 }
 0x14e   : > { %v1158_v10 = vmax.f32 %v2249_v62, 0.0 }
 0x14f   : > { %v1156_v4 = vmax.f32 %v2253_v1, 0.0  ;;  %v1170_v24 = vrot.slane %v1169_v9, 4 }
 0x151   : > { %v1176_v57 = vadd.f32 %v1156_v4, %v1155_v2  ;;  %v1774_v6 = vpop.f32.mrb[44].mxu0  ;;  %v1171_v31 = vadd.f32 %v1170_v24, %v1169_v9  ;;  %v1591_v24 = vld [vmem:[%s2377_s4] ss:$0 sm:$0xff] }
 0x152   : > { %v2265_v7 = vadd.f32 %v1774_v6, %v1044_v28  ;;  %v1132_v39 = vpop.f32.mrb[45].mxu0 }
 0x153   : > { %v1177_v12 = vadd.f32 %v1176_v57, %v1157_v5  ;;  %v2273_v14 = vadd.f32 %v1132_v39, %v2195_v8  ;;  %v1775_v15 = vpop.f32.mrb[46].mxu0  ;;  %v1172_v37 = vrot.slane %v1171_v31, 2 }
 0x154   : > { %v2275_v16 = vadd.f32 %v1775_v15, %v1047_v33  ;;  %v1135_v19 = vpop.f32.mrb[47].mxu0  ;;  %v1161_v8 = vmax.f32 %v2265_v7, 0.0 }
 0x155   : > { %v1159_v20 = vmax.f32 %v2273_v14, 0.0  ;;  %v1178_v22 = vadd.f32 %v1177_v12, %v1158_v10  ;;  %v2281_v23 = vadd.f32 %v1135_v19, %v2197_v11  ;;  %v1173_v43 = vadd.f32 %v1172_v37, %v1171_v31  ;;  %v1905_v19 = vld [vmem:[%s2378_s5] sm:$0xff]  }
 0x156   : > { %v1162_v28 = vmax.f32 %v2275_v16, 0.0 }
 0x157   : > { %v1179_v25 = vadd.f32 %v1178_v22, %v1159_v20  ;;  %v1160_v26 = vmax.f32 %v2281_v23, 0.0  ;;  %v1174_v47 = vrot.slane %v1173_v43, 1  ;;  %v1906_v22 = vld [vmem:[%s2378_s5 + $0x8] sm:$0xff]  }
 0x159   : > { %v1180_v27 = vadd.f32 %v1179_v25, %v1160_v26  ;;  %v1175_v55 = vadd.f32 %v1174_v47, %v1173_v43 }
 0x15b   : > { %v1181_v29 = vadd.f32 %v1180_v27, %v1161_v8  ;;  %v1189_v0 = vmul.f32 0.015625, %v1175_v55 }
 0x15d   : > { %v1182_v11 = vadd.f32 %v1181_v29, %v1162_v28 }
 0x15f   : > { %v1183_v33 = vrot.slane %v1182_v11, 4 }
 0x161   : > { %v1184_v40 = vadd.f32 %v1183_v33, %v1182_v11 }
 0x163   : > { %v1185_v32 = vrot.slane %v1184_v40, 2 }
 0x165   : > { %v1186_v51 = vadd.f32 %v1185_v32, %v1184_v40 }
 0x167   : > { %v1187_v35 = vrot.slane %v1186_v51, 1 }
 0x169   : > { %v1188_v50 = vadd.f32 %v1187_v35, %v1186_v51 }
 0x16b   : > { %v1190_v18 = vmul.f32 0.015625, %v1188_v50 }
 0x16d   : > { %1195 = vrot.lane.b32.xlu0 %v1190_v18, %s1921_s28 }
 0x171   : > { %1193 = vrot.lane.b32.xlu0 %v1189_v0, %s1921_s28 }
 0x1df   : > { %v1196_v59 = vpop.permute.xlu0 %1195 }
 0x1e0   : > { %v1200_v21 = vadd.f32 %v1196_v59, %v1190_v18 }
 0x1e2   : > { %v1202_v61 = vpack.c.bf16 %v1200_v21, %v1200_v21 }
 0x1e3   : > { %v1194_v3 = vpop.permute.xlu0 %1193 }
 0x1e4   : > { %v1221_v54 = vunpack.c.l.b16 %v1202_v61  ;;  %v1199_v57 = vadd.f32 %v1194_v3, %v1189_v0  ;;  %v1922_v61 = vmov 1966171168  }
 0x1e5   : > { %v1375_v3 = vunpack.c.l.s4 %v1922_v61 }
 0x1e6   : > { %v1201_v6 = vpack.c.bf16 %v1199_v57, %v1199_v57  ;;  %v1222_v39 = vrot.slane %v1221_v54, 7  ;;  %v1377_v54 = vlaneseq }
 0x1e7   : > { %v1376_v57 = vunpack.c.0.s8 %v1375_v3 }
 0x1e8   : > { %v1220_v9 = vunpack.c.l.b16 %v1201_v6  ;;  %v1378_v6 = vshrl.u32 %v1377_v54, 7 }
 0x1ea   : > { %v1224_v12 = vsel %vm1223_vm2, %v1222_v39, %v1220_v9  ;;  %v1379_v39 = vsub.s32 %v1376_v57, %v1378_v6 }
 0x1eb   : > { %v1225_v15 = vpack.c.b16 %v1224_v12, %v1224_v12 }
 0x1ed   : > { %1785 = vmatmul.mubr.msk.bf16.vlgmr.msra.gmra.mrb[32].mxu1 %vm831_vm0, %v1225_v15  ;;  %v1398_v15 = vsub.s32 0, %v1378_v6 }
 0x1ee   : > { %1792 = vmatprep.mubr.msk.bf16.mxu1 %vm1920_vm1, %v1919_v13  ;;  %1789 = vmatpush3.bf16.msra.mxu1 %v1905_v19 }
 0x1ef   : > { %1790 = vmatprep.subr.bf16.mxu1 %v1919_v13  ;;  %v1597_v13 = vld [vmem:[%s2379_s6] ss:$0 sm:$0xff] }
 0x1f2   : > { %1791 = vmatpush3.bf16.msra.mxu1 %v1906_v22 }
 0x2c0   : > { %v1287_v25 = vpop.f32.mrb[32].mxu1 }
 0x2c1   : > { %v1288_v27 = vadd.f32 %v1591_v24, %v1287_v25  ;;  %v1786_v29 = vpop.f32.mrb[33].mxu1 }
 0x2c2   : > { %v1290_v31 = vpop.f32.mrb[34].mxu1 }
 0x2c3   : > { %v1293_v11 = vmax.f32 %v1288_v27, 0.0  ;;  %v1787_v33 = vpop.f32.mrb[35].mxu1 }
 0x2c5   : > { %v1294_v37 = vpack.c.bf16 %v1293_v11, %v1293_v11 }
 0x2c7   : > { %1793 = vmatmul.mubr.msk.bf16.vlgmr.msra.gmra.mrb[36].mxu1 %vm1318_vm3, %v1294_v37 }
 0x39a   : > { %v1356_v40 = vpop.f32.mrb[36].mxu1 }
 0x39b   : > { %v1357_v32 = vadd.f32 %v1597_v13, %v1356_v40  ;;  %v1794_v43 = vpop.f32.mrb[37].mxu1 }
 0x39c   : > { %v1359_v51 = vpop.f32.mrb[38].mxu1 }
 0x39d   : > { %1362 = vrot.lane.b32.xlu1 %v1357_v32, %s1921_s28  ;;  %v1795_v35 = vpop.f32.mrb[39].mxu1 }
 0x40f   : > { %v1363_v47 = vpop.permute.xlu1 %1362 }
 0x410   : > { %v1364_v50 = vmax.f32 %v1357_v32, %v1363_v47 }
 0x412   : > { %v1365_v18 = vsub.f32 %v1357_v32, %v1364_v50 }
 0x414   : > { %v1366_v55 = vmul.f32 1.442695, %v1365_v18 }
 0x416   : > { %1907 = vpow2.f32 %v1366_v55 }
 0x420   : > { %v1908_v0 = vpop.eup %1907 }
 0x421   : > { %1368 = vrot.lane.b32.xlu1 %v1908_v0, %s1921_s28 }
 0x493   : > { %v1369_v59 = vpop.permute.xlu1 %1368 }
 0x494   : > { %v1370_v21 = vadd.f32 %v1908_v0, %v1369_v59 }
 0x496   : > { %1909 = vrcp.f32 %v1370_v21 }
 0x4a0   : > { %v1910_v9 = vpop.eup %1909 }
 0x4a1   : > { %v1372_v12 = vmul.f32 %v1910_v9, %v1908_v0 }
 0x4a3   : > { %v1380_v19 = vrot.slane %v1372_v12, %v1379_v39 }
 0x4a5   : > { %v1381_v22 = vcombine.high %v1380_v19, %v1380_v19  ;;  %v1388_v24 = vrot.slane %v1380_v19, %v1379_v39 }
 0x4a7   : > { %v1395_v25 = vrot.slane %v1381_v22, %v1379_v39  ;;  %v1399_v27 = vrot.slane %v1388_v24, %v1398_v15 }
 0x4a9   : > { %v1403_v29 = vrot.slane %v1395_v25, %v1398_v15  ;;  %v1406_v31 = vmul.f32 %v1399_v27, %v1147_v17  ;;  %v1407_v11 = vmul.f32 %v1399_v27, %v1148_v42  ;;  %v1408_v33 = vmul.f32 %v1399_v27, %v1149_v48 }
 0x4aa   : > { %v1409_v37 = vmul.f32 %v1399_v27, %v1150_v45  ;;  %v1410_v13 = vmul.f32 %v1399_v27, %v1151_v52  ;;  %v1411_v40 = vmul.f32 %v1399_v27, %v1152_v56  ;;  %v1412_v34 = vmul.f32 %v1399_v27, %v1153_v63 }
 0x4ab   : > { %v1413_v30 = vmul.f32 %v1399_v27, %v1154_v36  ;;  %v1414_v38 = vmul.f32 %v1403_v29, %v1155_v2  ;;  %v1415_v41 = vmul.f32 %v1403_v29, %v1156_v4  ;;  %v1416_v17 = vmul.f32 %v1403_v29, %v1157_v5  ;;  %1422 = vst [vmem:[%s2320_s18] sm:$0xff] %v1406_v31 }
 0x4ac   : > { %1423 = vst [vmem:[%s2320_s18 + $0x8] sm:$0xff] %v1407_v11  ;;  %1424 = vst [vmem:[%s2320_s18 + $0x10] sm:$0xff] %v1408_v33  ;;  %v1417_v42 = vmul.f32 %v1403_v29, %v1158_v10  ;;  %v1418_v48 = vmul.f32 %v1403_v29, %v1159_v20  ;;  %v1419_v44 = vmul.f32 %v1403_v29, %v1160_v26 }
 0x4ad   : > { %v1420_v45 = vmul.f32 %v1403_v29, %v1161_v8  ;;  %1425 = vst [vmem:[%s2320_s18 + $0x18] sm:$0xff] %v1409_v37  ;;  %1426 = vst [vmem:[%s2320_s18 + $0x20] sm:$0xff] %v1410_v13  ;;  %v1421_v46 = vmul.f32 %v1403_v29, %v1162_v28 }
 0x4ae   : > { %1427 = vst [vmem:[%s2320_s18 + $0x28] sm:$0xff] %v1411_v40  ;;  %1428 = vst [vmem:[%s2320_s18 + $0x30] sm:$0xff] %v1412_v34 }
 0x4af   : > { %1429 = vst [vmem:[%s2320_s18 + $0x38] sm:$0xff] %v1413_v30  ;;  %1430 = vst [vmem:[%s2320_s18 + $0x40] sm:$0xff] %v1414_v38 }
 0x4b0   : > { %1431 = vst [vmem:[%s2320_s18 + $0x48] sm:$0xff] %v1415_v41  ;;  %1432 = vst [vmem:[%s2320_s18 + $0x50] sm:$0xff] %v1416_v17 }
 0x4b1   : > { %1433 = vst [vmem:[%s2320_s18 + $0x58] sm:$0xff] %v1417_v42  ;;  %1434 = vst [vmem:[%s2320_s18 + $0x60] sm:$0xff] %v1418_v48 }
 0x4b2   : > { %1435 = vst [vmem:[%s2320_s18 + $0x68] sm:$0xff] %v1419_v44  ;;  %1436 = vst [vmem:[%s2320_s18 + $0x70] sm:$0xff] %v1420_v45 }
 0x4b3   : > { %1437 = vst [vmem:[%s2320_s18 + $0x78] sm:$0xff] %v1421_v46 }
 0x4b4 PF: > { %s17_s24 = sadd.s32 1, %s1917_s24  }
 0x4b5   : > { %p14_p4 = scmp.ge.s32.totalorder %s17_s24, 4  }
 0x4b7   :  { %16 = sbr.rel (!%p14_p4) target bundleno = 1 (0x1), region = 78 }

</bundles_post_ra>
